<compile_context>
chip_gen: v7x
topology: tpu7x:2x2x1
jax: 0.10.0
libtpu: 0.0.40
codegen_flags: <defaults>
</compile_context>

<pallas_src>
import jax
import jax.numpy as jnp
from jax.experimental import pallas as pl
from jax.experimental.pallas import tpu as pltpu


def _conv1x1_vpu_kernel(w_ref, b_ref, x_ref, o_ref):
    # w_ref: (Cout, Cin) f32 SMEM, b_ref: (Cout,) f32 SMEM
    # x_ref: (1, Cin, R, 128) VMEM, o_ref: (1, Cout, R, 128) VMEM
    cin = x_ref.shape[1]
    cout = o_ref.shape[1]
    # Hoist all SMEM scalar reads once per grid step (no per-iteration reissue).
    w = [[w_ref[co, ci] for ci in range(cin)] for co in range(cout)]
    b = [b_ref[co] for co in range(cout)]
    for co in range(cout):
        # Sublane-dense (R, 128) loads; reload per-co rather than caching rows.
        acc = x_ref[0, 0].astype(jnp.float32) * w[co][0] + b[co]
        for ci in range(1, cin):
            acc = acc + x_ref[0, ci].astype(jnp.float32) * w[co][ci]
        o_ref[0, co] = acc.astype(o_ref.dtype)


def _conv1x1_mxu_kernel(w_ref, b_ref, x_ref, o_ref):
    # w_ref: (Cout, Cin) VMEM in x dtype, b_ref: (Cout, 1) f32 VMEM
    # x_ref: (1, Cin, T) VMEM,            o_ref: (1, Cout, T) VMEM
    acc = jnp.dot(w_ref[...], x_ref[0],
                  preferred_element_type=jnp.float32)        # (Cout, T) f32
    o_ref[0] = (acc + b_ref[...]).astype(o_ref.dtype)


def modified_unet_out_block(x_nchw, weight, bias, *, tile_hw=65536):
    """Forward of ModifiedUnetOutBlock (spatial_dims=2, kernel_size=1, stride=1, bias=True).

    x_nchw: (N, Cin, H, W)
    weight: (Cout, Cin, 1, 1)   (PyTorch conv weight layout)
    bias:   (Cout,)
    returns (N, Cout, H, W)
    """
    # TODO(synk): dropout (training mode) is not implemented; dropout=None -> identity.
    N, Cin, H, W = x_nchw.shape
    Cout = weight.shape[0]
    HW = H * W
    itemsize = jnp.dtype(x_nchw.dtype).itemsize

    # Pad flattened spatial only to a lane multiple (128): most real shapes are
    # pad-free, so no extra HBM round trip.
    HW_pad = pl.cdiv(HW, 128) * 128
    rows_total = HW_pad // 128

    use_vpu = (Cin <= 8) and (Cout <= 16)

    # Spatial tile (columns): as large as a conservative, v7x-safe VMEM budget
    # allows (double-buffered input + output blocks, real itemsize).
    vmem_block_budget = 24 * 1024 * 1024
    bytes_per_col = (Cin + Cout) * itemsize * 2          # x2 = double buffering
    max_cols = max(128, (vmem_block_budget // bytes_per_col) // 128 * 128)
    cols = min(tile_hw, max_cols, rows_total * 128)
    desired_rows = max(1, cols // 128)

    if desired_rows >= rows_total:
        row_tile = rows_total                            # one spatial block (full dim: always legal)
    else:
        row_tile = max(8, (desired_rows // 8) * 8)       # multiple of 8; ragged tail masked by Pallas

    # Keep >= 2 grid blocks so both v7x TensorCores get work under megacore.
    if N * pl.cdiv(rows_total, row_tile) < 2 and rows_total >= 16:
        row_tile = ((pl.cdiv(rows_total, 2) + 7) // 8) * 8

    grid_s = pl.cdiv(rows_total, row_tile)
    grid = (N, grid_s)

    x3 = x_nchw.reshape(N, Cin, HW)                      # NCHW view; no transpose
    if HW_pad != HW:
        x3 = jnp.pad(x3, ((0, 0), (0, 0), (0, HW_pad - HW)))

    cost = pl.CostEstimate(
        flops=2 * N * HW_pad * Cin * Cout,
        transcendentals=0,
        bytes_accessed=N * HW_pad * (Cin + Cout) * itemsize + (Cout * Cin + Cout) * 4,
    )

    if use_vpu:
        # Sublane-dense layout: (N, Cin, rows, 128); free reshape (contiguous).
        x_in = x3.reshape(N, Cin, rows_total, 128)
        kernel = _conv1x1_vpu_kernel
        in_specs = [
            pl.BlockSpec(memory_space=pltpu.MemorySpace.SMEM),
            pl.BlockSpec(memory_space=pltpu.MemorySpace.SMEM),
            pl.BlockSpec((1, Cin, row_tile, 128), lambda n, s: (n, 0, s, 0)),
        ]
        out_specs = pl.BlockSpec((1, Cout, row_tile, 128), lambda n, s: (n, 0, s, 0))
        out_shape = jax.ShapeDtypeStruct((N, Cout, rows_total, 128), x_nchw.dtype)
        args = (weight.reshape(Cout, Cin).astype(jnp.float32),
                bias.astype(jnp.float32),
                x_in)
    else:
        t = row_tile * 128
        kernel = _conv1x1_mxu_kernel
        in_specs = [
            pl.BlockSpec((Cout, Cin), lambda n, s: (0, 0)),
            pl.BlockSpec((Cout, 1), lambda n, s: (0, 0)),
            pl.BlockSpec((1, Cin, t), lambda n, s: (n, 0, s)),
        ]
        out_specs = pl.BlockSpec((1, Cout, t), lambda n, s: (n, 0, s))
        out_shape = jax.ShapeDtypeStruct((N, Cout, HW_pad), x_nchw.dtype)
        # Native MXU dtype for operands (bf16 x bf16 -> f32 acc when input is bf16).
        args = (weight.reshape(Cout, Cin).astype(x_nchw.dtype),
                bias.astype(jnp.float32).reshape(Cout, 1),
                x3)

    out = pl.pallas_call(
        kernel,
        out_shape=out_shape,
        grid_spec=pltpu.PrefetchScalarGridSpec(
            num_scalar_prefetch=0,
            grid=grid,
            in_specs=in_specs,
            out_specs=out_specs,
        ),
        compiler_params=pltpu.CompilerParams(
            dimension_semantics=("parallel", "parallel"),
            vmem_limit_bytes=48 * 1024 * 1024,
        ),
        cost_estimate=cost,
    )(*args)

    out3 = out.reshape(N, Cout, HW_pad)
    if HW_pad != HW:
        out3 = out3[:, :, :HW]
    return out3.reshape(N, Cout, H, W)


def _reference(x, weight, bias):
    Cout, Cin = weight.shape[0], weight.shape[1]
    return (jnp.einsum("nchw,oc->nohw", x, weight.reshape(Cout, Cin),
                       precision=jax.lax.Precision.HIGHEST)
            + bias[None, :, None, None])


if __name__ == "__main__":
    # Small, deterministic config: spatial_dims=2, in_channels=4, out_channels=3.
    N, Cin, Cout, Hs, Ws = 2, 4, 3, 16, 16

    key = jax.random.PRNGKey(0)
    kx, kw, kb = jax.random.split(key, 3)

    x = jax.random.normal(kx, (N, Cin, Hs, Ws), dtype=jnp.float32)
    weight = jax.random.normal(kw, (Cout, Cin, 1, 1), dtype=jnp.float32) * 0.1
    bias = jax.random.normal(kb, (Cout,), dtype=jnp.float32) * 0.1

    out = jax.block_until_ready(modified_unet_out_block(x, weight, bias))
    ref = _reference(x, weight, bias)
    assert out.shape == (N, Cout, Hs, Ws)
    assert jnp.allclose(out, ref, atol=1e-5, rtol=1e-5)

    # Padded-spatial path (H*W not a multiple of 128).
    x2 = jax.random.normal(kx, (N, Cin, 10, 10), dtype=jnp.float32)
    out2 = jax.block_until_ready(modified_unet_out_block(x2, weight, bias))
    ref2 = _reference(x2, weight, bias)
    assert out2.shape == (N, Cout, 10, 10)
    assert jnp.allclose(out2, ref2, atol=1e-5, rtol=1e-5)

    # MXU (large-channel) path.
    Cin3, Cout3 = 32, 20
    kx3, kw3, kb3 = jax.random.split(jax.random.PRNGKey(1), 3)
    x3 = jax.random.normal(kx3, (N, Cin3, Hs, Ws), dtype=jnp.float32)
    w3 = jax.random.normal(kw3, (Cout3, Cin3, 1, 1), dtype=jnp.float32) * 0.1
    b3 = jax.random.normal(kb3, (Cout3,), dtype=jnp.float32) * 0.1
    out3 = jax.block_until_ready(modified_unet_out_block(x3, w3, b3))
    ref3 = _reference(x3, w3, b3)
    assert out3.shape == (N, Cout3, Hs, Ws)
    assert jnp.allclose(out3, ref3, atol=1e-4, rtol=1e-4)

    print("KERNEL_OK")
</pallas_src>

<mosaic_0001>
module attributes {stable_mosaic.version = 11 : i64} {
  func.func @_conv1x1_vpu_kernel(%arg0: i32, %arg1: i32, %arg2: memref<3x4xf32, #tpu.memory_space<smem>>, %arg3: memref<3xf32, #tpu.memory_space<smem>>, %arg4: memref<1x4x2x128xf32, #tpu.memory_space<vmem>>, %arg5: memref<1x3x2x128xf32, #tpu.memory_space<vmem>>) attributes {dimension_semantics = [#tpu.dimension_semantics<parallel>, #tpu.dimension_semantics<parallel>], iteration_bounds = array<i64: 2, 1>, scalar_prefetch = 0 : i64, scratch_operands = 0 : i64, tpu.core_type = #tpu.core_type<tc>, window_params = [{transform_indices = @transform_0, window_bounds = array<i64: 3, 4>}, {transform_indices = @transform_1, window_bounds = array<i64: 3>}, {transform_indices = @transform_2, window_bounds = array<i64: 1, 4, 2, 128>}, {transform_indices = @transform_3, window_bounds = array<i64: 1, 3, 2, 128>}]} {
    %c0 = arith.constant 0 : index
    %c0_0 = arith.constant 0 : index
    %0 = memref.load %arg2[%c0, %c0_0] : memref<3x4xf32, #tpu.memory_space<smem>>
    %c0_1 = arith.constant 0 : index
    %c1 = arith.constant 1 : index
    %1 = memref.load %arg2[%c0_1, %c1] : memref<3x4xf32, #tpu.memory_space<smem>>
    %c0_2 = arith.constant 0 : index
    %c2 = arith.constant 2 : index
    %2 = memref.load %arg2[%c0_2, %c2] : memref<3x4xf32, #tpu.memory_space<smem>>
    %c0_3 = arith.constant 0 : index
    %c3 = arith.constant 3 : index
    %3 = memref.load %arg2[%c0_3, %c3] : memref<3x4xf32, #tpu.memory_space<smem>>
    %c1_4 = arith.constant 1 : index
    %c0_5 = arith.constant 0 : index
    %4 = memref.load %arg2[%c1_4, %c0_5] : memref<3x4xf32, #tpu.memory_space<smem>>
    %c1_6 = arith.constant 1 : index
    %c1_7 = arith.constant 1 : index
    %5 = memref.load %arg2[%c1_6, %c1_7] : memref<3x4xf32, #tpu.memory_space<smem>>
    %c1_8 = arith.constant 1 : index
    %c2_9 = arith.constant 2 : index
    %6 = memref.load %arg2[%c1_8, %c2_9] : memref<3x4xf32, #tpu.memory_space<smem>>
    %c1_10 = arith.constant 1 : index
    %c3_11 = arith.constant 3 : index
    %7 = memref.load %arg2[%c1_10, %c3_11] : memref<3x4xf32, #tpu.memory_space<smem>>
    %c2_12 = arith.constant 2 : index
    %c0_13 = arith.constant 0 : index
    %8 = memref.load %arg2[%c2_12, %c0_13] : memref<3x4xf32, #tpu.memory_space<smem>>
    %c2_14 = arith.constant 2 : index
    %c1_15 = arith.constant 1 : index
    %9 = memref.load %arg2[%c2_14, %c1_15] : memref<3x4xf32, #tpu.memory_space<smem>>
    %c2_16 = arith.constant 2 : index
    %c2_17 = arith.constant 2 : index
    %10 = memref.load %arg2[%c2_16, %c2_17] : memref<3x4xf32, #tpu.memory_space<smem>>
    %c2_18 = arith.constant 2 : index
    %c3_19 = arith.constant 3 : index
    %11 = memref.load %arg2[%c2_18, %c3_19] : memref<3x4xf32, #tpu.memory_space<smem>>
    %c0_20 = arith.constant 0 : index
    %12 = memref.load %arg3[%c0_20] : memref<3xf32, #tpu.memory_space<smem>>
    %c1_21 = arith.constant 1 : index
    %13 = memref.load %arg3[%c1_21] : memref<3xf32, #tpu.memory_space<smem>>
    %c2_22 = arith.constant 2 : index
    %14 = memref.load %arg3[%c2_22] : memref<3xf32, #tpu.memory_space<smem>>
    %c0_23 = arith.constant 0 : index
    %c0_24 = arith.constant 0 : index
    %c0_25 = arith.constant 0 : index
    %c0_26 = arith.constant 0 : index
    %15 = vector.load %arg4[%c0_23, %c0_24, %c0_25, %c0_26] : memref<1x4x2x128xf32, #tpu.memory_space<vmem>>, vector<1x1x2x128xf32>
    %16 = vector.shape_cast %15 : vector<1x1x2x128xf32> to vector<2x128xf32>
    %17 = vector.broadcast %0 : f32 to vector<2x128xf32>
    %18 = arith.mulf %16, %17 : vector<2x128xf32>
    %19 = vector.broadcast %12 : f32 to vector<2x128xf32>
    %20 = arith.addf %18, %19 : vector<2x128xf32>
    %c0_27 = arith.constant 0 : index
    %c1_28 = arith.constant 1 : index
    %c0_29 = arith.constant 0 : index
    %c0_30 = arith.constant 0 : index
    %21 = vector.load %arg4[%c0_27, %c1_28, %c0_29, %c0_30] : memref<1x4x2x128xf32, #tpu.memory_space<vmem>>, vector<1x1x2x128xf32>
    %22 = vector.shape_cast %21 : vector<1x1x2x128xf32> to vector<2x128xf32>
    %23 = vector.broadcast %1 : f32 to vector<2x128xf32>
    %24 = arith.mulf %22, %23 : vector<2x128xf32>
    %25 = arith.addf %20, %24 : vector<2x128xf32>
    %c0_31 = arith.constant 0 : index
    %c2_32 = arith.constant 2 : index
    %c0_33 = arith.constant 0 : index
    %c0_34 = arith.constant 0 : index
    %26 = vector.load %arg4[%c0_31, %c2_32, %c0_33, %c0_34] : memref<1x4x2x128xf32, #tpu.memory_space<vmem>>, vector<1x1x2x128xf32>
    %27 = vector.shape_cast %26 : vector<1x1x2x128xf32> to vector<2x128xf32>
    %28 = vector.broadcast %2 : f32 to vector<2x128xf32>
    %29 = arith.mulf %27, %28 : vector<2x128xf32>
    %30 = arith.addf %25, %29 : vector<2x128xf32>
    %c0_35 = arith.constant 0 : index
    %c3_36 = arith.constant 3 : index
    %c0_37 = arith.constant 0 : index
    %c0_38 = arith.constant 0 : index
    %31 = vector.load %arg4[%c0_35, %c3_36, %c0_37, %c0_38] : memref<1x4x2x128xf32, #tpu.memory_space<vmem>>, vector<1x1x2x128xf32>
    %32 = vector.shape_cast %31 : vector<1x1x2x128xf32> to vector<2x128xf32>
    %33 = vector.broadcast %3 : f32 to vector<2x128xf32>
    %34 = arith.mulf %32, %33 : vector<2x128xf32>
    %35 = arith.addf %30, %34 : vector<2x128xf32>
    %c0_39 = arith.constant 0 : index
    %c0_40 = arith.constant 0 : index
    %c0_41 = arith.constant 0 : index
    %c0_42 = arith.constant 0 : index
    %36 = vector.load %arg5[%c0_39, %c0_40, %c0_41, %c0_42] : memref<1x3x2x128xf32, #tpu.memory_space<vmem>>, vector<1x1x2x128xf32>
    %37 = vector.shape_cast %36 : vector<1x1x2x128xf32> to vector<2x128xf32>
    %38 = vector.shape_cast %35 : vector<2x128xf32> to vector<1x1x2x128xf32>
    tpu.vector_store %arg5[%c0_39, %c0_40, %c0_41, %c0_42], %38 {strides = array<i32>} : memref<1x3x2x128xf32, #tpu.memory_space<vmem>>, vector<1x1x2x128xf32>,
    %c0_43 = arith.constant 0 : index
    %c0_44 = arith.constant 0 : index
    %c0_45 = arith.constant 0 : index
    %c0_46 = arith.constant 0 : index
    %39 = vector.load %arg4[%c0_43, %c0_44, %c0_45, %c0_46] : memref<1x4x2x128xf32, #tpu.memory_space<vmem>>, vector<1x1x2x128xf32>
    %40 = vector.shape_cast %39 : vector<1x1x2x128xf32> to vector<2x128xf32>
    %41 = vector.broadcast %4 : f32 to vector<2x128xf32>
    %42 = arith.mulf %40, %41 : vector<2x128xf32>
    %43 = vector.broadcast %13 : f32 to vector<2x128xf32>
    %44 = arith.addf %42, %43 : vector<2x128xf32>
    %c0_47 = arith.constant 0 : index
    %c1_48 = arith.constant 1 : index
    %c0_49 = arith.constant 0 : index
    %c0_50 = arith.constant 0 : index
    %45 = vector.load %arg4[%c0_47, %c1_48, %c0_49, %c0_50] : memref<1x4x2x128xf32, #tpu.memory_space<vmem>>, vector<1x1x2x128xf32>
    %46 = vector.shape_cast %45 : vector<1x1x2x128xf32> to vector<2x128xf32>
    %47 = vector.broadcast %5 : f32 to vector<2x128xf32>
    %48 = arith.mulf %46, %47 : vector<2x128xf32>
    %49 = arith.addf %44, %48 : vector<2x128xf32>
    %c0_51 = arith.constant 0 : index
    %c2_52 = arith.constant 2 : index
    %c0_53 = arith.constant 0 : index
    %c0_54 = arith.constant 0 : index
    %50 = vector.load %arg4[%c0_51, %c2_52, %c0_53, %c0_54] : memref<1x4x2x128xf32, #tpu.memory_space<vmem>>, vector<1x1x2x128xf32>
    %51 = vector.shape_cast %50 : vector<1x1x2x128xf32> to vector<2x128xf32>
    %52 = vector.broadcast %6 : f32 to vector<2x128xf32>
    %53 = arith.mulf %51, %52 : vector<2x128xf32>
    %54 = arith.addf %49, %53 : vector<2x128xf32>
    %c0_55 = arith.constant 0 : index
    %c3_56 = arith.constant 3 : index
    %c0_57 = arith.constant 0 : index
    %c0_58 = arith.constant 0 : index
    %55 = vector.load %arg4[%c0_55, %c3_56, %c0_57, %c0_58] : memref<1x4x2x128xf32, #tpu.memory_space<vmem>>, vector<1x1x2x128xf32>
    %56 = vector.shape_cast %55 : vector<1x1x2x128xf32> to vector<2x128xf32>
    %57 = vector.broadcast %7 : f32 to vector<2x128xf32>
    %58 = arith.mulf %56, %57 : vector<2x128xf32>
    %59 = arith.addf %54, %58 : vector<2x128xf32>
    %c0_59 = arith.constant 0 : index
    %c1_60 = arith.constant 1 : index
    %c0_61 = arith.constant 0 : index
    %c0_62 = arith.constant 0 : index
    %60 = vector.load %arg5[%c0_59, %c1_60, %c0_61, %c0_62] : memref<1x3x2x128xf32, #tpu.memory_space<vmem>>, vector<1x1x2x128xf32>
    %61 = vector.shape_cast %60 : vector<1x1x2x128xf32> to vector<2x128xf32>
    %62 = vector.shape_cast %59 : vector<2x128xf32> to vector<1x1x2x128xf32>
    tpu.vector_store %arg5[%c0_59, %c1_60, %c0_61, %c0_62], %62 {strides = array<i32>} : memref<1x3x2x128xf32, #tpu.memory_space<vmem>>, vector<1x1x2x128xf32>,
    %c0_63 = arith.constant 0 : index
    %c0_64 = arith.constant 0 : index
    %c0_65 = arith.constant 0 : index
    %c0_66 = arith.constant 0 : index
    %63 = vector.load %arg4[%c0_63, %c0_64, %c0_65, %c0_66] : memref<1x4x2x128xf32, #tpu.memory_space<vmem>>, vector<1x1x2x128xf32>
    %64 = vector.shape_cast %63 : vector<1x1x2x128xf32> to vector<2x128xf32>
    %65 = vector.broadcast %8 : f32 to vector<2x128xf32>
    %66 = arith.mulf %64, %65 : vector<2x128xf32>
    %67 = vector.broadcast %14 : f32 to vector<2x128xf32>
    %68 = arith.addf %66, %67 : vector<2x128xf32>
    %c0_67 = arith.constant 0 : index
    %c1_68 = arith.constant 1 : index
    %c0_69 = arith.constant 0 : index
    %c0_70 = arith.constant 0 : index
    %69 = vector.load %arg4[%c0_67, %c1_68, %c0_69, %c0_70] : memref<1x4x2x128xf32, #tpu.memory_space<vmem>>, vector<1x1x2x128xf32>
    %70 = vector.shape_cast %69 : vector<1x1x2x128xf32> to vector<2x128xf32>
    %71 = vector.broadcast %9 : f32 to vector<2x128xf32>
    %72 = arith.mulf %70, %71 : vector<2x128xf32>
    %73 = arith.addf %68, %72 : vector<2x128xf32>
    %c0_71 = arith.constant 0 : index
    %c2_72 = arith.constant 2 : index
    %c0_73 = arith.constant 0 : index
    %c0_74 = arith.constant 0 : index
    %74 = vector.load %arg4[%c0_71, %c2_72, %c0_73, %c0_74] : memref<1x4x2x128xf32, #tpu.memory_space<vmem>>, vector<1x1x2x128xf32>
    %75 = vector.shape_cast %74 : vector<1x1x2x128xf32> to vector<2x128xf32>
    %76 = vector.broadcast %10 : f32 to vector<2x128xf32>
    %77 = arith.mulf %75, %76 : vector<2x128xf32>
    %78 = arith.addf %73, %77 : vector<2x128xf32>
    %c0_75 = arith.constant 0 : index
    %c3_76 = arith.constant 3 : index
    %c0_77 = arith.constant 0 : index
    %c0_78 = arith.constant 0 : index
    %79 = vector.load %arg4[%c0_75, %c3_76, %c0_77, %c0_78] : memref<1x4x2x128xf32, #tpu.memory_space<vmem>>, vector<1x1x2x128xf32>
    %80 = vector.shape_cast %79 : vector<1x1x2x128xf32> to vector<2x128xf32>
    %81 = vector.broadcast %11 : f32 to vector<2x128xf32>
    %82 = arith.mulf %80, %81 : vector<2x128xf32>
    %83 = arith.addf %78, %82 : vector<2x128xf32>
    %c0_79 = arith.constant 0 : index
    %c2_80 = arith.constant 2 : index
    %c0_81 = arith.constant 0 : index
    %c0_82 = arith.constant 0 : index
    %84 = vector.load %arg5[%c0_79, %c2_80, %c0_81, %c0_82] : memref<1x3x2x128xf32, #tpu.memory_space<vmem>>, vector<1x1x2x128xf32>
    %85 = vector.shape_cast %84 : vector<1x1x2x128xf32> to vector<2x128xf32>
    %86 = vector.shape_cast %83 : vector<2x128xf32> to vector<1x1x2x128xf32>
    tpu.vector_store %arg5[%c0_79, %c2_80, %c0_81, %c0_82], %86 {strides = array<i32>} : memref<1x3x2x128xf32, #tpu.memory_space<vmem>>, vector<1x1x2x128xf32>,
    return
  }
  func.func @transform_0(%arg0: i32, %arg1: i32) -> (i32, i32) {
    %c0_i32 = arith.constant 0 : i32
    %c0_i32_0 = arith.constant 0 : i32
    %c0_i32_1 = arith.constant 0 : i32
    return %c0_i32, %c0_i32_0 : i32, i32
  }
  func.func @transform_1(%arg0: i32, %arg1: i32) -> i32 {
    %c0_i32 = arith.constant 0 : i32
    %c0_i32_0 = arith.constant 0 : i32
    return %c0_i32 : i32
  }
  func.func @transform_2(%arg0: i32, %arg1: i32) -> (i32, i32, i32, i32) {
    %c0_i32 = arith.constant 0 : i32
    %c0_i32_0 = arith.constant 0 : i32
    %c0_i32_1 = arith.constant 0 : i32
    return %arg0, %c0_i32, %arg1, %c0_i32_0 : i32, i32, i32, i32
  }
  func.func @transform_3(%arg0: i32, %arg1: i32) -> (i32, i32, i32, i32) {
    %c0_i32 = arith.constant 0 : i32
    %c0_i32_0 = arith.constant 0 : i32
    %c0_i32_1 = arith.constant 0 : i32
    return %arg0, %c0_i32, %arg1, %c0_i32_0 : i32, i32, i32, i32
  }
}

</mosaic_0001>

<bundles_post_ra>
// kernel: tpu_custom_call.1
= control target key start
LH: loop header
LB: loop body
LE: loop exit
PB: predicated region body
PF: predicated region fallthrough
CT: control target
= control target key end

     0   :  { %8 = vsyncpa [#allocation5], 0  ;;  %s1006_s0 = inlined_call_operand.hbm [shape: f32[3,4], index: 0, kind: input, shape index: {}]   ;;  %s1007_s1 = inlined_call_operand.vmem [shape: f32[3], index: 1, kind: input, shape index: {}]   ;;  %s1008_s2 = inlined_call_operand.hbm [shape: f32[2,4,2,128], index: 2, kind: input, shape index: {}]   ;;  %s1009_s3 = inlined_call_operand.hbm [shape: f32[2,3,2,128], index: 3, kind: output, shape index: {}]  }
   0x1   :  { %9 = vsyncpa [#allocation6], 0 }
   0x2   :  { %10 = vsyncpa [#allocation3], 0 }
   0x3   :  { %12 = vsyncpa [#allocation3 + $0x1], 0 }
   0x4   :  { %13 = vsyncpa [#allocation4], 0 }
   0x5   :  { %15 = vsyncpa [#allocation4 + $0x1], 0  ;;  %s737_s12 = smov 0   ;;  %s739_s13 = smov 0  }
   0x6   :  { %s741_s14 = smov 0   ;;  %s743_s15 = smov 0  }
   0x7   :  { %s745_s16 = smov 0   ;;  %s747_s17 = smov 0  }
   0x8 LB: > { %s429_s18 = sadd.s32 4294967295, %s707_s17   ;;  %s430_s19 = sadd.s32 4294967294, %s707_s17   ;;  %s707_s17 = sphi %s747_s17, %s21_s17   ;;  %s703_s16 = sphi %s745_s16, %s1030_s16   ;;  %s699_s15 = sphi %s743_s15, %s1029_s15   ;;  %s695_s14 = sphi %s741_s14, %s1028_s14   ;;  %s691_s13 = sphi %s739_s13, %s1027_s13   ;;  %s687_s12 = sphi %s737_s12, %s1026_s12  }
   0x9   : > { %s84_s20 = sadd.s32 1, %s695_s14  ;;  %p91_p0 = scmp.ne.s32.totalorder %s695_s14, %s691_s13 }
   0xa   : > { %p92_p1 = scmp.eq.s32.totalorder %s707_s17, 0  ;;  %p97_p2 = scmp.ne.s32.totalorder %s691_s13, %s687_s12 }
   0xb   : > { %p775_p3 = scmp.eq.s32.totalorder %s429_s18, 0  ;;  %p123_p4 = scmp.eq.s32.totalorder %s429_s18, 1 }
   0xc   : > { %p93_p5 = por %p92_p1, %p91_p0  ;;  %p129_p6 = scmp.eq.s32.totalorder %s430_s19, 1 }
   0xd   : > { %s1014_s21 = scalar_select %p775_p3, 1, 0 }
   0xe   : > { %p781_p7 = por %p775_p3, %p97_p2  ;;  %p785_p8 = por %p123_p4, %p91_p0 }
   0xf   : > { %p789_p9 = por %p129_p6, %p97_p2  ;;  %p431_p10 = scmp.ge.s32.totalorder %s707_s17, 1 }
  0x10   : > { %s1015_s22 = scalar_select %p781_p7, 1, 0 }
  0x11   : > { %s1016_s23 = scalar_select %p785_p8, 1, 0 }
  0x12   : > { %s1017_s24 = scalar_select %p789_p9, 1, 0 }
  0x13   : > { %p136_p11 = scmp.lt.s32.totalorder %s707_s17, 3  ;;  %p501_p1 = scmp.lt.s32.totalorder %s707_s17, 2 }
  0x14   : > { %s158_s28 = sshll.u32 %s1007_s1, 4  ;;  %s169_s4 = sand.u32 1, %s695_s14   ;;  %s159_s28 = int_to_ptr.vmem [resolvable:$true] %s158_s28 }
  0x15   : > { %p796_p13 = pnand %p431_p10, %p136_p11  ;;  %p806_p4 = pnand %p501_p1, %p93_p5 }
  0x16   : > { %s33_s5 = sadd.s32 1, %s703_s16  ;;  %s559_s8 = scalar_lea.hbm %s1006_s0, 64 }
  0x17   : > { %p484_p0 = pneg %p796_p13  ;;  %p560_p5 = scmp.ne.s32.totalorder %s1006_s0, %s559_s8 }
  0x18   : > { %p566_p1 = scmp.lt.u32.totalorder %s559_s8, %s1006_s0 }
  0x19   : > { %p812_p2 = pnand %p484_p0, %p775_p3 }
  0x1b   : > { %p561_p6 = pneg %p812_p2 }
  0x1d   : > { %p562_p10 = pnand %p561_p6, %p560_p5 }
  0x1f   : > { %p563_p11 = pneg %p562_p10 }
  0x21   : > { %p568_p0 = pnand %p566_p1, %p563_p11 }
  0x23   : > { %571 = shalt.err (!%p568_p0)
}
  0x24   : > { %s709_s19 = smov [#allocation2]   ;;  %s572_s6 = scalar_lea.vmem %s159_s28, 16 }
  0x25   : > { %487 = dma.hbm_to_smem (!%p812_p2), %s1006_s0, 64, %s709_s19, [#allocation5]  }
  0x26   : > { %p573_p12 = scmp.ne.s32.totalorder %s159_s28, %s572_s6  ;;  %p580_p7 = scmp.lt.s32.totalorder %s159_s28, %s159_s28 }
  0x27   : > { %p581_p5 = scmp.lt.s32.totalorder %s572_s6, %s572_s6 }
  0x28   : > { %p575_p9 = pnand %p573_p12, %p561_p6 }
  0x29   : > { %p582_p10 = por %p581_p5, %p580_p7 }
  0x2a   : > { %p576_p8 = pneg %p575_p9 }
  0x2c   : > { %p583_p3 = pnand %p582_p10, %p576_p8 }
  0x2e   : > { %586 = shalt.err (!%p583_p3)
}
  0x2f   : > { %s710_s7 = smov [#allocation7]   ;;  %p35_p11 = scmp.ge.s32.totalorder %s33_s5, 2 }
  0x30   : > { %490 = dma.vmem_to_smem (!%p812_p2), %s159_s28, 16, %s710_s7, [#allocation6]  }
  0x31   : > { %s435_s8 = sshll.u32 %s169_s4, 3  ;;  %s469_s9 = sshll.u32 %s703_s16, 7 }
  0x32   : > { %s1032_s5 = smov (%p35_p11, %s33_s5), 0  ;;  %s844_s30 = scalar_lea.hbm %s1008_s2, %s469_s9 }
  0x33   : > { %s79_s18 = ssub.s32 %s703_s16, %s1032_s5  ;;  %s173_s19 = scalar_lea.vmem [#allocation8], %s435_s8 }
  0x34   : > { %s181_s28 = sshll.u32 %s173_s19, 4  ;;  %p82_p3 = scmp.eq.s32.totalorder %s79_s18, 0  ;;  %s848_s28 = int_to_ptr.vmem [resolvable:$true] %s181_s28 }
  0x35   : > { %s857_s27 = scalar_lea.sflag [#allocation3], %s169_s4  ;;  %s587_s6 = scalar_lea.hbm %s844_s30, 128 }
  0x36   : > { %s853_s26 = scalar_select %p82_p3, %s695_s14, %s84_s20  }
  0x37   : > { %p588_p7 = scmp.ne.s32.totalorder %s844_s30, %s587_s6  ;;  %p589_p8 = pneg %p806_p4 }
  0x38   : > { %s592_s9 = scalar_lea.hbm %s1008_s2, 256  ;;  %p593_p2 = scmp.lt.u32.totalorder %s844_s30, %s1008_s2 }
  0x39   : > { %p590_p9 = pnand %p589_p8, %p588_p7  ;;  %p594_p6 = scmp.lt.u32.totalorder %s592_s9, %s587_s6 }
  0x3a   : > { %p596_p0 = scmp.lt.u32.totalorder %s587_s6, %s844_s30 }
  0x3b   : > { %p591_p12 = pneg %p590_p9  ;;  %p595_p1 = por %p594_p6, %p593_p2 }
  0x3d   : > { %p597_p5 = por %p596_p0, %p595_p1 }
  0x3f   : > { %p598_p10 = pnand %p597_p5, %p591_p12 }
  0x41   : > { %601 = shalt.err (!%p598_p10)
}
  0x42   : > { %s602_s20 = scalar_lea.vmem %s848_s28, 128  ;;  %s711_s4 = smov [#allocation8]  }
  0x43   : > { %p603_p11 = scmp.ne.s32.totalorder %s848_s28, %s602_s20  ;;  %s607_s18 = sshll.u32 %s711_s4, 4  ;;  %s608_s18 = int_to_ptr.vmem [resolvable:$false] %s607_s18 }
  0x44   : > { %s609_s19 = scalar_lea.vmem %s608_s18, 256  ;;  %p610_p9 = scmp.lt.s32.totalorder %s848_s28, %s608_s18 }
  0x45   : > { %p605_p3 = pnand %p603_p11, %p589_p8  ;;  %p611_p2 = scmp.lt.s32.totalorder %s609_s19, %s602_s20 }
  0x47   : > { %p606_p7 = pneg %p605_p3  ;;  %p612_p6 = por %p611_p2, %p610_p9 }
  0x49   : > { %p613_p1 = pnand %p612_p6, %p606_p7 }
  0x4b   : > { %616 = shalt.err (!%p613_p1)
}
  0x4c   : > { %s712_s6 = smov 32   ;;  %s713_s7 = smov 2  }
  0x4d   : > { %494 = dma.hbm_to_vmem [thread:$0]  (!%p806_p4), %s844_s30, 128, %s848_s28, %s857_s27, %s712_s6, %s712_s6, %s713_s7  }
  0x4e   : > { %193 = sbr.rel (%p796_p13) target bundleno = 131 (0x83), region = 32  ;;  %p1021_p8 = scmp.ne.s32.totalorder (!%p796_p13), %s1014_s21, 0 }
  0x55   : > { %670 = dma.done.wait (%p1021_p8), [#allocation5], 64  }
  0x56   : > { %672 = vsyncadd (%p1021_p8), [#allocation5], 4294967232 }
  0x57   : > { %674 = dma.done.wait (%p1021_p8), [#allocation6], 16  }
  0x58   : > { %676 = vsyncadd (%p1021_p8), [#allocation6], 4294967280  ;;  %s896_s8 = sand.u32 1, %s691_s13   ;;  %p1022_p13 = scmp.ne.s32.totalorder %s1015_s22, 0 }
  0x59   : > { %s441_s25 = sshll.u32 %s896_s8, 3  ;;  %s204_s29 = scalar_lea.sflag [#allocation3], %s896_s8 }
  0x5a   : > { %s900_s30 = scalar_lea.vmem [#allocation8], %s441_s25 }
  0x5b   : > { %678 = dma.done.wait (%p1022_p13), %s204_s29, 128  }
  0x5c   : > { %680 = vsyncadd (%p1022_p13), %s204_s29, 4294967168 }
  0x5d   : > { %212 = sfence }
  0x5e   : > { %s231_s28 = sld [smem:[#allocation2]]  ;;  %s442_s21 = sld [smem:[#allocation2 + $0x1]]  ;;  %v246_v0 = vld [vmem:[%s900_s30] sm:$0x3]  ;;  %v455_v1 = vld [vmem:[%s900_s30 + $0x2] sm:$0x3] }
  0x5f   : > { %s443_s27 = sld [smem:[#allocation2 + $0x2]]  ;;  %s906_s9 = sld [smem:[#allocation2 + $0x3]]  ;;  %v456_v3 = vld [vmem:[%s900_s30 + $0x4] sm:$0x3]  ;;  %v457_v7 = vld [vmem:[%s900_s30 + $0x6] sm:$0x3] }
  0x60   : > { %s243_s10 = sld [smem:[#allocation7]]  ;;  %s910_s20 = sld [smem:[#allocation2 + $0x81]]  ;;  %v267_v10 = vld [vmem:[%s900_s30] sm:$0x3]  ;;  %v458_v12 = vld [vmem:[%s900_s30 + $0x2] sm:$0x3] }
  0x61   : > { %s445_s11 = sld [smem:[#allocation2 + $0x80]]  ;;  %s912_s22 = sld [smem:[#allocation2 + $0x82]]  ;;  %v459_v13 = vld [vmem:[%s900_s30 + $0x4] sm:$0x3]  ;;  %v460_v17 = vld [vmem:[%s900_s30 + $0x6] sm:$0x3] }
  0x62   : > { %s915_s4 = sld [smem:[#allocation2 + $0x83]]  ;;  %s917_s18 = sld [smem:[#allocation7 + $0x1]]  ;;  %v286_v22 = vld [vmem:[%s900_s30] sm:$0x3]  ;;  %v462_v23 = vld [vmem:[%s900_s30 + $0x2] sm:$0x3] }
  0x63   : > { %s920_s19 = sld [smem:[#allocation2 + $0x100]]  ;;  %s922_s6 = sld [smem:[#allocation2 + $0x101]]  ;;  %v463_v32 = vld [vmem:[%s900_s30 + $0x4] sm:$0x3]  ;;  %v464_v40 = vld [vmem:[%s900_s30 + $0x6] sm:$0x3] }
  0x64   : > { %v247_v2 = vstv %s231_s28  ;;  %v253_v5 = vstv %s442_s21  ;;  %s926_s7 = sld [smem:[#allocation2 + $0x102]]  ;;  %s928_s25 = sld [smem:[#allocation2 + $0x103]] }
  0x65   : > { %v248_v4 = vmul.f32 %v247_v2, %v246_v0  ;;  %v258_v6 = vstv %s443_s27  ;;  %v254_v8 = vmul.f32 %v455_v1, %v253_v5  ;;  %v263_v9 = vstv %s906_s9  ;;  %s932_s29 = sld [smem:[#allocation7 + $0x2]]  ;;  %s470_s28 = smul.u32 6, %s896_s8 }
  0x66   : > { %v249_v11 = vstv %s243_s10  ;;  %v259_v15 = vmul.f32 %v456_v3, %v258_v6  ;;  %v264_v18 = vmul.f32 %v457_v7, %v263_v9  ;;  %v273_v20 = vstv %s910_s20  ;;  %s471_s9 = smul.u32 96, %s699_s15  ;;  %s306_s20 = scalar_lea.sflag [#allocation4], %s896_s8 }
  0x67   : > { %v250_v14 = vadd.f32 %v249_v11, %v248_v4  ;;  %v268_v16 = vstv %s445_s11  ;;  %v277_v21 = vstv %s912_s22  ;;  %v274_v26 = vmul.f32 %v458_v12, %v273_v20  ;;  %s230_s21 = scalar_lea.vmem [#allocation9], %s470_s28  ;;  %p1023_p12 = scmp.ne.s32.totalorder %s1016_s23, 0 }
  0x68   : > { %v269_v19 = vmul.f32 %v268_v16, %v267_v10  ;;  %v270_v25 = vstv %s917_s18  ;;  %v278_v27 = vmul.f32 %v459_v13, %v277_v21  ;;  %v281_v29 = vstv %s915_s4  ;;  %s320_s27 = sshll.u32 %s230_s21, 4  ;;  %s957_s11 = scalar_lea.hbm %s1009_s3, %s471_s9  ;;  %s952_s27 = int_to_ptr.vmem [resolvable:$true] %s320_s27 }
  0x69   : > { %v255_v24 = vadd.f32 %v254_v8, %v250_v14  ;;  %v287_v30 = vstv %s920_s19  ;;  %v292_v31 = vstv %s922_s6  ;;  %v282_v34 = vmul.f32 %v460_v17, %v281_v29  ;;  %s617_s22 = scalar_lea.vmem %s952_s27, 96  ;;  %s714_s15 = smov [#allocation9]  }
  0x6a   : > { %v271_v28 = vadd.f32 %v270_v25, %v269_v19  ;;  %v288_v35 = vmul.f32 %v287_v30, %v286_v22  ;;  %v293_v36 = vmul.f32 %v462_v23, %v292_v31  ;;  %v296_v39 = vstv %s926_s7  ;;  %p618_p4 = scmp.ne.s32.totalorder %s952_s27, %s617_s22  ;;  %s621_s4 = sshll.u32 %s714_s15, 4  ;;  %s622_s4 = int_to_ptr.vmem [resolvable:$false] %s621_s4 }
  0x6b   : > { %v260_v33 = vadd.f32 %v259_v15, %v255_v24  ;;  %v289_v38 = vstv %s932_s29  ;;  %v300_v41 = vstv %s928_s25  ;;  %v297_v44 = vmul.f32 %v463_v32, %v296_v39  ;;  %s623_s18 = scalar_lea.vmem %s622_s4, 192  ;;  %p624_p10 = scmp.lt.s32.totalorder %s952_s27, %s622_s4 }
  0x6c   : > { %v275_v37 = vadd.f32 %v274_v26, %v271_v28  ;;  %v290_v43 = vadd.f32 %v289_v38, %v288_v35  ;;  %v301_v47 = vmul.f32 %v464_v40, %v300_v41  ;;  %p619_p0 = pnand %p618_p4, %p1023_p12  ;;  %p625_p11 = scmp.lt.s32.totalorder %s623_s18, %s617_s22 }
  0x6d   : > { %v265_v42 = vadd.f32 %v264_v18, %v260_v33 }
  0x6e   : > { %v279_v45 = vadd.f32 %v278_v27, %v275_v37  ;;  %v294_v46 = vadd.f32 %v293_v36, %v290_v43  ;;  %p620_p5 = pneg %p619_p0  ;;  %p626_p3 = por %p625_p11, %p624_p10 }
  0x6f   : > { %266 = vst [vmem:[%s230_s21] sm:$0x3] %v265_v42 }
  0x70   : > { %v283_v48 = vadd.f32 %v282_v34, %v279_v45  ;;  %v298_v49 = vadd.f32 %v297_v44, %v294_v46  ;;  %p627_p7 = pnand %p626_p3, %p620_p5 }
  0x72   : > { %461 = vst [vmem:[%s230_s21 + $0x2] sm:$0x3] %v283_v48  ;;  %v302_v50 = vadd.f32 %v301_v47, %v298_v49 }
  0x74   : > { %465 = vst [vmem:[%s230_s21 + $0x4] sm:$0x3] %v302_v50 }
  0x75   : > { %630 = shalt.err (!%p627_p7)
}
  0x76   : > { %s631_s19 = scalar_lea.hbm %s957_s11, 96  ;;  %s635_s25 = scalar_lea.hbm %s1009_s3, 192 }
  0x77   : > { %p632_p9 = scmp.ne.s32.totalorder %s957_s11, %s631_s19  ;;  %p636_p1 = scmp.lt.u32.totalorder %s957_s11, %s1009_s3 }
  0x78   : > { %p637_p8 = scmp.lt.u32.totalorder %s635_s25, %s631_s19  ;;  %p639_p4 = scmp.lt.u32.totalorder %s631_s19, %s957_s11 }
  0x79   : > { %p633_p2 = pnand %p632_p9, %p1023_p12 }
  0x7a   : > { %p638_p13 = por %p637_p8, %p636_p1 }
  0x7b   : > { %p634_p6 = pneg %p633_p2 }
  0x7c   : > { %p640_p0 = por %p639_p4, %p638_p13 }
  0x7e   : > { %p641_p5 = pnand %p640_p0, %p634_p6 }
  0x80   : > { %644 = shalt.err (!%p641_p5)
}
  0x81   : > { %s715_s21 = smov 32   ;;  %s716_s9 = smov 2  }
  0x82   : > { %482 = dma.vmem_to_hbm [thread:$0]  (%p1023_p12), %s952_s27, 96, %s957_s11, %s306_s20, %s715_s21, %s715_s21, %s716_s9  }
  0x83 PF: > { %s335_s30 = sand.u32 1, %s687_s12   ;;  %p1024_p10 = scmp.ne.s32.totalorder %s1017_s24, 0 }
  0x84   : > { %p1025_p11 = scmp.ge.s32.totalorder %s707_s17, 2  ;;  %s336_s10 = scalar_lea.sflag [#allocation4], %s335_s30 }
  0x86   : > { %p496_p3 = pnand %p1025_p11, %p1024_p10 }
  0x88   : > { %682 = dma.done.wait (!%p496_p3), %s336_s10, 96  }
  0x89   : > { %684 = vsyncadd (!%p496_p3), %s336_s10, 4294967200  ;;  %s21_s17 = sadd.s32 1, %s707_s17   ;;  %s1026_s12 = smov %s691_s13 }
  0x8a   : > { %p18_p7 = scmp.ge.s32.totalorder %s21_s17, 4   ;;  %s1027_s13 = smov %s695_s14 }
  0x8b   : > { %s1028_s14 = smov %s853_s26  ;;  %s1029_s15 = smov %s703_s16 }
  0x8c   : > { %s1030_s16 = smov %s1032_s5  ;;  %20 = sbr.rel (!%p18_p7) target bundleno = 8 (0x8), region = 92 }
  0x93   :  { %341 = vsyncpa [#allocation3], 1 }
  0x94   :  { %343 = vsyncpa [#allocation3 + $0x1], 1 }
  0x95   :  { %344 = vsyncpa [#allocation4], 1 }
  0x96   :  { %346 = vsyncpa [#allocation4 + $0x1], 1 }
  0x97   :  { %347 = vsyncpa [#allocation5], 1 }
  0x98   :  { %349 = vsyncpa [#allocation5 + $0x1], 1 }
  0x99   :  { %350 = vsyncpa [#allocation6], 1 }
  0x9a   :  { %352 = vsyncpa [#allocation6 + $0x1], 1 }

</bundles_post_ra>
